<compile_context>
chip_gen: v7x
topology: tpu7x:2x2x1
jax: 0.10.0
libtpu: 0.0.40
codegen_flags: <defaults>
</compile_context>

<pallas_src>
import numpy as np
import jax
import jax.numpy as jnp
from jax.experimental import pallas as pl
from jax.experimental.pallas import tpu as pltpu


def _spectrum_relu_kernel(x_ref, w_ref, b_ref, o_ref):
    # x_ref: (TR, TL); w_ref / b_ref: (1, TL) f32, broadcast over sublanes.
    x = x_ref[...].astype(jnp.float32)
    y = x * w_ref[...] + b_ref[...]
    o_ref[...] = jnp.maximum(y, 0).astype(o_ref.dtype)


def _round_up(v, m):
    return ((v + m - 1) // m) * m


def _tpu_config():
    """Chip-aware (block_bytes, vmem_limit_bytes, num_cores)."""
    kind = ""
    try:
        kind = jax.devices()[0].device_kind.lower()
    except Exception:
        pass
    if "v7" in kind:
        # Faster HBM -> larger blocks to amortize per-step overhead, but only
        # 64 MiB physical VMEM -> cap scoped VMEM at 48 MiB.  2 TensorCores.
        return 8 << 20, 48 << 20, 2
    # v5e / v6e (and unknown): 4 MiB blocks, generous-but-safe 64 MiB limit.
    return 4 << 20, 64 << 20, 1


def _choose_tiles(lead, hw_p, itemsize, block_bytes, sub, min_steps,
                  max_lane_tile=8192):
    # Lane tile: full (already 128-aligned) spatial extent when small,
    # otherwise a large multiple of 128 (lane-dense, unmasked stores).
    tl = hw_p if hw_p <= max_lane_tile else max_lane_tile

    # Row tile: keep an x block around `block_bytes`, rounded down to the
    # dtype's sublane-packing granularity.
    max_rows = max(sub, (block_bytes // (tl * itemsize)) // sub * sub)
    tr = lead if lead <= max_rows else max_rows

    # Guarantee enough grid steps for every TensorCore to stream (v7x).
    if min_steps > 1:
        steps = pl.cdiv(lead, tr) * pl.cdiv(hw_p, tl)
        if steps < min_steps and lead > sub:
            want_r = pl.cdiv(min_steps, pl.cdiv(hw_p, tl))
            tr = min(tr, max(sub, _round_up(pl.cdiv(lead, want_r), sub)))
            steps = pl.cdiv(lead, tr) * pl.cdiv(hw_p, tl)
        if steps < min_steps and hw_p > 128:
            want_l = pl.cdiv(min_steps, pl.cdiv(lead, tr))
            tl = min(tl, max(128, _round_up(pl.cdiv(hw_p, want_l), 128)))
    return tr, tl


def spectrum_relu(x, weight, bias):
    """relu(weight * x + bias); weight/bias broadcast over x's leading dims."""
    orig_shape = x.shape
    hw = int(np.prod(weight.shape))
    total = int(np.prod(orig_shape))
    assert total % hw == 0, "weight/bias must match the trailing dims of x"
    lead = total // hw

    x2 = x.reshape(lead, hw)
    # Parameters stay f32 (PyTorch computes the affine in the f32 param dtype).
    w2 = weight.reshape(1, hw).astype(jnp.float32)
    b2 = bias.reshape(1, hw).astype(jnp.float32)

    # Pad lanes to a multiple of 128 so stores are always unmasked/lane-dense.
    hw_p = _round_up(hw, 128)
    if hw_p != hw:
        pad = hw_p - hw
        x2 = jnp.pad(x2, ((0, 0), (0, pad)))
        w2 = jnp.pad(w2, ((0, 0), (0, pad)))
        b2 = jnp.pad(b2, ((0, 0), (0, pad)))

    block_bytes, vmem_limit, num_cores = _tpu_config()
    itemsize = jnp.dtype(x.dtype).itemsize
    sub = max(8, 32 // itemsize)          # sublane packing granularity
    min_steps = 2 * num_cores if num_cores > 1 else 1
    tr, tl = _choose_tiles(lead, hw_p, itemsize, block_bytes, sub, min_steps)

    # Lane-tile axis outer, row-tile axis inner: the (1, tl) weight/bias
    # blocks keep the same block index across the inner loop -> stay resident.
    grid = (pl.cdiv(hw_p, tl), pl.cdiv(lead, tr))

    out = pl.pallas_call(
        _spectrum_relu_kernel,
        out_shape=jax.ShapeDtypeStruct((lead, hw_p), x.dtype),
        grid=grid,
        in_specs=[
            pl.BlockSpec((tr, tl), lambda j, i: (i, j)),
            pl.BlockSpec((1, tl), lambda j, i: (0, j)),
            pl.BlockSpec((1, tl), lambda j, i: (0, j)),
        ],
        out_specs=pl.BlockSpec((tr, tl), lambda j, i: (i, j)),
        compiler_params=pltpu.CompilerParams(
            dimension_semantics=("parallel", "parallel"),
            vmem_limit_bytes=vmem_limit),
    )(x2, w2, b2)

    if hw_p != hw:
        out = out[:, :hw]
    return out.reshape(orig_shape)


def reference_forward(x, weight, bias):
    """Pure-JAX reference mirroring the PyTorch forward exactly."""
    return jnp.maximum(weight * x + bias, 0.0).astype(x.dtype)


if __name__ == "__main__":
    key = jax.random.PRNGKey(0)
    kx, kw, kb = jax.random.split(key, 3)

    N, C, H, W = 2, 4, 16, 16
    x = jax.random.normal(kx, (N, C, H, W), dtype=jnp.float32)
    # Module init is weight=ones / bias=zeros; use random values so the
    # broadcast-affine path is actually exercised (deterministic via PRNGKey(0)).
    weight = (1.0 + 0.5 * jax.random.normal(kw, (H, W))).astype(jnp.float32)
    bias = (0.5 * jax.random.normal(kb, (H, W))).astype(jnp.float32)

    y = jax.block_until_ready(spectrum_relu(x, weight, bias))
    y_ref = jax.block_until_ready(reference_forward(x, weight, bias))

    np.testing.assert_allclose(np.asarray(y), np.asarray(y_ref),
                               rtol=1e-6, atol=1e-6)
    assert y.shape == (N, C, H, W)
    print("KERNEL_OK")
</pallas_src>

<mosaic_0001>
module attributes {stable_mosaic.version = 11 : i64} {
  func.func @_spectrum_relu_kernel(%arg0: i32, %arg1: i32, %arg2: memref<8x256xf32, #tpu.memory_space<vmem>>, %arg3: memref<1x256xf32, #tpu.memory_space<vmem>>, %arg4: memref<1x256xf32, #tpu.memory_space<vmem>>, %arg5: memref<8x256xf32, #tpu.memory_space<vmem>>) attributes {dimension_semantics = [#tpu.dimension_semantics<parallel>, #tpu.dimension_semantics<parallel>], iteration_bounds = array<i64: 1, 1>, scalar_prefetch = 0 : i64, scratch_operands = 0 : i64, tpu.core_type = #tpu.core_type<tc>, window_params = [{transform_indices = @transform_0, window_bounds = array<i64: 8, 256>}, {transform_indices = @transform_1, window_bounds = array<i64: 1, 256>}, {transform_indices = @transform_2, window_bounds = array<i64: 1, 256>}, {transform_indices = @transform_3, window_bounds = array<i64: 8, 256>}]} {
    %c0 = arith.constant 0 : index
    %c0_0 = arith.constant 0 : index
    %0 = vector.load %arg2[%c0, %c0_0] : memref<8x256xf32, #tpu.memory_space<vmem>>, vector<8x256xf32>
    %c0_1 = arith.constant 0 : index
    %c0_2 = arith.constant 0 : index
    %1 = vector.load %arg3[%c0_1, %c0_2] : memref<1x256xf32, #tpu.memory_space<vmem>>, vector<1x256xf32>
    %2 = vector.broadcast %1 : vector<1x256xf32> to vector<8x256xf32>
    %3 = arith.mulf %0, %2 : vector<8x256xf32>
    %c0_3 = arith.constant 0 : index
    %c0_4 = arith.constant 0 : index
    %4 = vector.load %arg4[%c0_3, %c0_4] : memref<1x256xf32, #tpu.memory_space<vmem>>, vector<1x256xf32>
    %5 = vector.broadcast %4 : vector<1x256xf32> to vector<8x256xf32>
    %6 = arith.addf %3, %5 : vector<8x256xf32>
    %cst = arith.constant 0.000000e+00 : f32
    %7 = vector.broadcast %cst : f32 to vector<8x256xf32>
    %8 = arith.maximumf %6, %7 : vector<8x256xf32>
    %c0_5 = arith.constant 0 : index
    %c0_6 = arith.constant 0 : index
    %9 = vector.load %arg5[%c0_5, %c0_6] : memref<8x256xf32, #tpu.memory_space<vmem>>, vector<8x256xf32>
    tpu.vector_store %arg5[%c0_5, %c0_6], %8 {strides = array<i32>} : memref<8x256xf32, #tpu.memory_space<vmem>>, vector<8x256xf32>,
    return
  }
  func.func @transform_0(%arg0: i32, %arg1: i32) -> (i32, i32) {
    %c0_i32 = arith.constant 0 : i32
    return %arg1, %arg0 : i32, i32
  }
  func.func @transform_1(%arg0: i32, %arg1: i32) -> (i32, i32) {
    %c0_i32 = arith.constant 0 : i32
    %c0_i32_0 = arith.constant 0 : i32
    return %c0_i32, %arg0 : i32, i32
  }
  func.func @transform_2(%arg0: i32, %arg1: i32) -> (i32, i32) {
    %c0_i32 = arith.constant 0 : i32
    %c0_i32_0 = arith.constant 0 : i32
    return %c0_i32, %arg0 : i32, i32
  }
  func.func @transform_3(%arg0: i32, %arg1: i32) -> (i32, i32) {
    %c0_i32 = arith.constant 0 : i32
    return %arg1, %arg0 : i32, i32
  }
}

</mosaic_0001>

<bundles_post_ra>
// kernel: tpu_custom_call.1
= control target key start
LH: loop header
LB: loop body
LE: loop exit
PB: predicated region body
PF: predicated region fallthrough
CT: control target
= control target key end

     0   :  { %8 = vsyncpa [#allocation3], 0  ;;  %s270_s0 = inlined_call_operand.hbm [shape: f32[8,256], index: 0, kind: input, shape index: {}]   ;;  %s271_s1 = inlined_call_operand.hbm [shape: f32[1,256], index: 1, kind: input, shape index: {}]   ;;  %s272_s2 = inlined_call_operand.hbm [shape: f32[1,256], index: 2, kind: input, shape index: {}]   ;;  %s273_s3 = inlined_call_operand.hbm [shape: f32[8,256], index: 3, kind: output, shape index: {}]  }
   0x1   :  { %9 = vsyncpa [#allocation6], 0 }
   0x2   :  { %10 = vsyncpa [#allocation4], 0  ;;  %s198_s12 = smov [#allocation5]   ;;  %s199_s14 = smov [#allocation2]  }
   0x3   :  { %s27_s13 = sshll.u32 %s198_s12, 4  ;;  %s17_s15 = sshll.u32 %s199_s14, 4  ;;  %s28_s13 = int_to_ptr.vmem [resolvable:$true] %s27_s13  ;;  %s18_s15 = int_to_ptr.vmem [resolvable:$true] %s17_s15 }
   0x4   :  { %s104_s18 = scalar_lea.hbm %s271_s1, 32 }
   0x5   :  { %p105_p0 = scmp.ne.s32.totalorder %s271_s1, %s104_s18  ;;  %p108_p1 = scmp.lt.u32.totalorder %s104_s18, %s271_s1 }
   0x7   :  { %p110_p2 = pnand %p108_p1, %p105_p0 }
   0x9   :  { %113 = shalt.err (!%p110_p2)
}
   0xa   :  { %s114_s23 = scalar_lea.vmem %s28_s13, 32  ;;  %p119_p4 = scmp.lt.s32.totalorder %s28_s13, %s28_s13 }
   0xb   :  { %p115_p3 = scmp.ne.s32.totalorder %s28_s13, %s114_s23  ;;  %p120_p5 = scmp.lt.s32.totalorder %s114_s23, %s114_s23 }
   0xd   :  { %p121_p6 = por %p120_p5, %p119_p4 }
   0xf   :  { %p122_p7 = pnand %p121_p6, %p115_p3 }
  0x11   :  { %125 = shalt.err (!%p122_p7)
}
  0x12   :  { %30 = dma.hbm_to_vmem [thread:$0]  %s271_s1, 32, %s28_s13, [#allocation6]  }
  0x13   :  { %s126_s28 = scalar_lea.hbm %s270_s0, 256 }
  0x14   :  { %p127_p8 = scmp.ne.s32.totalorder %s270_s0, %s126_s28  ;;  %p130_p9 = scmp.lt.u32.totalorder %s126_s28, %s270_s0 }
  0x16   :  { %p132_p10 = pnand %p130_p9, %p127_p8 }
  0x18   :  { %135 = shalt.err (!%p132_p10)
}
  0x19   :  { %s136_s6 = scalar_lea.vmem %s18_s15, 256  ;;  %p141_p12 = scmp.lt.s32.totalorder %s18_s15, %s18_s15 }
  0x1a   :  { %p137_p11 = scmp.ne.s32.totalorder %s18_s15, %s136_s6  ;;  %p142_p13 = scmp.lt.s32.totalorder %s136_s6, %s136_s6 }
  0x1c   :  { %p143_p0 = por %p142_p13, %p141_p12 }
  0x1e   :  { %p144_p1 = pnand %p143_p0, %p137_p11 }
  0x20   :  { %147 = shalt.err (!%p144_p1)
}
  0x21   :  { %20 = dma.hbm_to_vmem [thread:$0]  %s270_s0, 256, %s18_s15, [#allocation3]  }
  0x22   :  { %s200_s8 = smov [#allocation7]   ;;  %s148_s12 = scalar_lea.hbm %s272_s2, 32 }
  0x23   :  { %s37_s9 = sshll.u32 %s200_s8, 4  ;;  %p149_p2 = scmp.ne.s32.totalorder %s272_s2, %s148_s12  ;;  %s38_s9 = int_to_ptr.vmem [resolvable:$true] %s37_s9 }
  0x24   :  { %p152_p3 = scmp.lt.u32.totalorder %s148_s12, %s272_s2 }
  0x26   :  { %p154_p4 = pnand %p152_p3, %p149_p2 }
  0x28   :  { %157 = shalt.err (!%p154_p4)
}
  0x29   :  { %s158_s18 = scalar_lea.vmem %s38_s9, 32  ;;  %p163_p6 = scmp.lt.s32.totalorder %s38_s9, %s38_s9 }
  0x2a   :  { %p159_p5 = scmp.ne.s32.totalorder %s38_s9, %s158_s18  ;;  %p164_p7 = scmp.lt.s32.totalorder %s158_s18, %s158_s18 }
  0x2c   :  { %p165_p8 = por %p164_p7, %p163_p6 }
  0x2e   :  { %p166_p9 = pnand %p165_p8, %p159_p5 }
  0x30   :  { %169 = shalt.err (!%p166_p9)
}
  0x31   :  { %40 = dma.hbm_to_vmem [thread:$0]  %s272_s2, 32, %s38_s9, [#allocation6]  }
  0x32   :  { %192 = dma.done.wait [#allocation3], 256  }
  0x33   :  { %193 = vsyncadd [#allocation3], 4294967040 }
  0x34   :  { %194 = dma.done.wait [#allocation6], 64  }
  0x35   :  { %195 = vsyncadd [#allocation6], 4294967232  ;;  %v54_v0 = vlaneseq  ;;  %v50_v4 = vld [vmem:[#allocation2] sm:$0xff]  ;;  %v52_v5 = vld [vmem:[#allocation5] sm:$0x3]  ;;  %s201_s19 = smov [#allocation8]  }
  0x36   :  { %v66_v6 = vld [vmem:[#allocation7] sm:$0x3]  ;;  %v51_v9 = vld [vmem:[#allocation2 + $0x8] sm:$0xff]  ;;  %s90_s2 = sshll.u32 %s201_s19, 4  ;;  %s91_s2 = int_to_ptr.vmem [resolvable:$true] %s90_s2 }
  0x37   :  { %v55_v1 = vshrl.u32 %v54_v0, 7  ;;  %s170_s20 = scalar_lea.vmem %s91_s2, 256  ;;  %p175_p11 = scmp.lt.s32.totalorder %s91_s2, %s91_s2 }
  0x38   :  { %p171_p10 = scmp.ne.s32.totalorder %s91_s2, %s170_s20  ;;  %p176_p12 = scmp.lt.s32.totalorder %s170_s20, %s170_s20 }
  0x39   :  { %v56_v2 = vsub.s32 0, %v55_v1  ;;  %v60_v3 = vsub.s32 1, %v55_v1 }
  0x3a   :  { %p177_p13 = por %p176_p12, %p175_p11 }
  0x3b   :  { %v57_v7 = vrot.slane %v52_v5, %v56_v2  ;;  %v71_v8 = vrot.slane %v66_v6, %v56_v2  ;;  %v61_v10 = vrot.slane %v52_v5, %v60_v3  ;;  %v75_v11 = vrot.slane %v66_v6, %v60_v3 }
  0x3c   :  { %p178_p0 = pnand %p177_p13, %p171_p10 }
  0x3d   :  { %v64_v12 = vmul.f32 %v57_v7, %v50_v4  ;;  %v65_v13 = vmul.f32 %v61_v10, %v51_v9 }
  0x3f   :  { %v78_v14 = vadd.f32 %v71_v8, %v64_v12  ;;  %v79_v15 = vadd.f32 %v75_v11, %v65_v13 }
  0x41   :  { %v80_v16 = vmax.f32 %v78_v14, 0.0  ;;  %v81_v17 = vmax.f32 %v79_v15, 0.0 }
  0x43   :  { %82 = vst [vmem:[#allocation8] sm:$0xff] %v80_v16  ;;  %83 = vst [vmem:[#allocation8 + $0x8] sm:$0xff] %v81_v17 }
  0x44   :  { %181 = shalt.err (!%p178_p0)
}
  0x45   :  { %s182_s23 = scalar_lea.hbm %s273_s3, 256 }
  0x46   :  { %p183_p1 = scmp.ne.s32.totalorder %s273_s3, %s182_s23  ;;  %p186_p2 = scmp.lt.u32.totalorder %s182_s23, %s273_s3 }
  0x48   :  { %p188_p3 = pnand %p186_p2, %p183_p1 }
  0x4a   :  { %191 = shalt.err (!%p188_p3)
}
  0x4b   :  { %93 = dma.vmem_to_hbm [thread:$0]  %s91_s2, 256, %s273_s3, [#allocation4]  }
  0x4c   :  { %196 = dma.done.wait [#allocation4], 256  }
  0x4d   :  { %197 = vsyncadd [#allocation4], 4294967040 }
  0x4e   :  { %97 = vsyncpa [#allocation3], 1 }
  0x4f   :  { %98 = vsyncpa [#allocation6], 1 }
  0x50   :  { %99 = vsyncpa [#allocation4], 1 }

</bundles_post_ra>
